<compile_context>
chip_gen: v7x
topology: tpu7x:2x2x1
jax: 0.10.0
libtpu: 0.0.40
codegen_flags: <defaults>
</compile_context>

<pallas_src>
import math
import jax
import jax.numpy as jnp
from jax.experimental import pallas as pl
from jax.experimental.pallas import tpu as pltpu


def _add_pe_kernel(x_ref, pe_ref, o_ref):
    # x_ref / o_ref: (TB, TS, D); pe_ref: (TS, D) broadcasts over the batch dim.
    # Lane-dense (last dim = D) unmasked store.
    o_ref[...] = x_ref[...] + pe_ref[...]


def make_positional_encoding(d_model: int, max_seq_length: int,
                             dtype=jnp.float32) -> jnp.ndarray:
    """Builds the (max_seq, d_model) sin/cos table once, already in `dtype`
    (hoists the per-forward cast out of the hot path). Matches the PyTorch
    0::2 / 1::2 interleave, including odd d_model."""
    position = jnp.arange(max_seq_length, dtype=jnp.float32)[:, None]          # (S, 1)
    div_term = jnp.exp(
        jnp.arange(0, d_model, 2, dtype=jnp.float32) * -(math.log(10000.0) / d_model)
    )                                                                          # (ceil(D/2),)
    ang = position * div_term                                                  # (S, ceil(D/2))
    pe = jnp.zeros((max_seq_length, d_model), jnp.float32)
    pe = pe.at[:, 0::2].set(jnp.sin(ang))
    pe = pe.at[:, 1::2].set(jnp.cos(ang)[:, : d_model // 2])
    return pe.astype(dtype)


def _divisors(n: int):
    return [d for d in range(1, n + 1) if n % d == 0]


def _hw_hints():
    """Gen-gated (block_budget_bytes, want_multi_step) with safe fallbacks."""
    kind = ""
    try:
        kind = jax.devices()[0].device_kind.lower()
    except Exception:
        pass
    vmem = None
    try:
        vmem = pltpu.get_tpu_info().vmem_capacity_bytes
    except Exception:
        pass
    is_v7x = ("v7" in kind) or ("7x" in kind) or (
        vmem is not None and vmem <= 80 * 1024 * 1024)
    if is_v7x:            # 64 MiB VMEM, 2 TensorCores: smaller blocks, even >=4 steps
        return 10 * 1024 * 1024, True
    if "v5" in kind:      # 16 MiB scoped default on v5e; keep well inside it
        return 12 * 1024 * 1024, False
    if "v6" in kind:      # >85% of the 1.4 TB/s roofline already at 24 MiB blocks
        return 24 * 1024 * 1024, False
    return 16 * 1024 * 1024, False   # unknown chip: conservative middle ground


def _choose_tiles(B: int, S: int, D: int, itemsize: int,
                  block_budget_bytes: int, want_multi_step: bool):
    """Pick (batch_tile, seq_tile). Resident VMEM per grid step is the
    double-buffered x + out + pe blocks: (4*tb + 2) * ts * D * itemsize."""
    pack = max(8, 32 // itemsize)            # sublane packing: 8 f32, 16 bf16, 32 int8
    if S % pack == 0:
        ts_cands = [d for d in _divisors(S) if d % pack == 0]
    else:
        ts_cands = [S]                       # full-extent seq block (layout-legal)
    tb_cands = _divisors(B)

    def resident(tb, ts):
        return (4 * tb + 2) * ts * D * itemsize

    def n_steps(tb, ts):
        return (B // tb) * (S // ts)

    pairs = [(tb, ts) for tb in tb_cands for ts in ts_cands]
    fitting = [p for p in pairs if resident(*p) <= block_budget_bytes]
    if not fitting:                          # hardened fallback: smallest possible block
        fitting = [min(pairs, key=lambda p: resident(*p))]

    if want_multi_step:                      # v7x: both TCs streaming, balanced load
        balanced = [p for p in fitting if n_steps(*p) >= 4 and n_steps(*p) % 2 == 0]
        if balanced:
            fitting = balanced
    # biggest block that fits; tie-break toward fewer grid steps
    return max(fitting, key=lambda p: (resident(*p), -n_steps(*p)))


def positional_encoding_forward(x: jnp.ndarray, pe: jnp.ndarray) -> jnp.ndarray:
    B, S, D = x.shape
    assert pe.shape[0] >= S and pe.shape[1] == D, "pe buffer too small for input"
    if pe.dtype != x.dtype:                  # steady state: no-op (cast hoisted to setup)
        pe = pe.astype(x.dtype)

    itemsize = x.dtype.itemsize
    block_budget, want_multi_step = _hw_hints()
    tb, ts = _choose_tiles(B, S, D, itemsize, block_budget, want_multi_step)
    n_b, n_s = B // tb, S // ts

    pack = max(8, 32 // itemsize)
    if S % pack != 0 and pe.shape[0] != S:
        # full-extent seq block: pe's block dim must then equal its array dim
        pe = pe[:S]

    resident = (4 * tb + 2) * ts * D * itemsize
    vmem_limit = 32 * 1024 * 1024            # safe on v5e/v6e/v7x
    if resident > vmem_limit - 2 * 1024 * 1024:   # only on the hardened fallback path
        vmem_limit = min(resident + 4 * 1024 * 1024, 64 * 1024 * 1024)

    return pl.pallas_call(
        _add_pe_kernel,
        out_shape=jax.ShapeDtypeStruct((B, S, D), x.dtype),
        # batch innermost: pe block index is constant across consecutive steps,
        # so each pe tile is DMA'd exactly once per seq tile.
        grid=(n_s, n_b),
        in_specs=[
            pl.BlockSpec((tb, ts, D), lambda s, b: (b, s, 0)),
            pl.BlockSpec((ts, D), lambda s, b: (s, 0)),
        ],
        out_specs=pl.BlockSpec((tb, ts, D), lambda s, b: (b, s, 0)),
        # output reuses x's HBM buffer (donate x at the jit boundary)
        input_output_aliases={0: 0},
        compiler_params=pltpu.CompilerParams(
            dimension_semantics=("parallel", "parallel"),
            vmem_limit_bytes=vmem_limit,
        ),
    )(x, pe)


if __name__ == "__main__":
    # Small shapes consistent with the module (d_model / max_seq scaled down).
    d_model = 128
    max_seq_length = 128
    B, S = 2, 64

    key = jax.random.PRNGKey(0)
    x = jax.random.normal(key, (B, S, d_model), dtype=jnp.float32)
    pe = make_positional_encoding(d_model, max_seq_length, dtype=x.dtype)

    # reference computed BEFORE donating x to the kernel
    ref = x + pe[None, :S, :]

    fwd = jax.jit(positional_encoding_forward, donate_argnums=(0,))
    out = jax.block_until_ready(fwd(x, pe))

    assert out.shape == (B, S, d_model)
    assert jnp.allclose(out, ref, atol=1e-6), "mismatch vs reference"
    print("KERNEL_OK")
</pallas_src>

<mosaic_0001>
module attributes {stable_mosaic.version = 11 : i64} {
  func.func @_add_pe_kernel(%arg0: i32, %arg1: i32, %arg2: memref<2x64x128xf32, #tpu.memory_space<vmem>>, %arg3: memref<64x128xf32, #tpu.memory_space<vmem>>, %arg4: memref<2x64x128xf32, #tpu.memory_space<vmem>>) attributes {dimension_semantics = [#tpu.dimension_semantics<parallel>, #tpu.dimension_semantics<parallel>], iteration_bounds = array<i64: 1, 1>, scalar_prefetch = 0 : i64, scratch_operands = 0 : i64, tpu.core_type = #tpu.core_type<tc>, window_params = [{transform_indices = @transform_0, window_bounds = array<i64: 2, 64, 128>}, {transform_indices = @transform_1, window_bounds = array<i64: 64, 128>}, {transform_indices = @transform_2, window_bounds = array<i64: 2, 64, 128>}]} {
    %c0 = arith.constant 0 : index
    %c0_0 = arith.constant 0 : index
    %c0_1 = arith.constant 0 : index
    %0 = vector.load %arg2[%c0, %c0_0, %c0_1] : memref<2x64x128xf32, #tpu.memory_space<vmem>>, vector<2x64x128xf32>
    %c0_2 = arith.constant 0 : index
    %c0_3 = arith.constant 0 : index
    %1 = vector.load %arg3[%c0_2, %c0_3] : memref<64x128xf32, #tpu.memory_space<vmem>>, vector<64x128xf32>
    %2 = vector.shape_cast %1 : vector<64x128xf32> to vector<1x64x128xf32>
    %3 = vector.broadcast %2 : vector<1x64x128xf32> to vector<2x64x128xf32>
    %4 = arith.addf %0, %3 : vector<2x64x128xf32>
    %c0_4 = arith.constant 0 : index
    %c0_5 = arith.constant 0 : index
    %c0_6 = arith.constant 0 : index
    %5 = vector.load %arg4[%c0_4, %c0_5, %c0_6] : memref<2x64x128xf32, #tpu.memory_space<vmem>>, vector<2x64x128xf32>
    tpu.vector_store %arg4[%c0_4, %c0_5, %c0_6], %4 {strides = array<i32>} : memref<2x64x128xf32, #tpu.memory_space<vmem>>, vector<2x64x128xf32>,
    return
  }
  func.func @transform_0(%arg0: i32, %arg1: i32) -> (i32, i32, i32) {
    %c0_i32 = arith.constant 0 : i32
    %c0_i32_0 = arith.constant 0 : i32
    return %arg1, %arg0, %c0_i32 : i32, i32, i32
  }
  func.func @transform_1(%arg0: i32, %arg1: i32) -> (i32, i32) {
    %c0_i32 = arith.constant 0 : i32
    %c0_i32_0 = arith.constant 0 : i32
    return %arg0, %c0_i32 : i32, i32
  }
  func.func @transform_2(%arg0: i32, %arg1: i32) -> (i32, i32, i32) {
    %c0_i32 = arith.constant 0 : i32
    %c0_i32_0 = arith.constant 0 : i32
    return %arg1, %arg0, %c0_i32 : i32, i32, i32
  }
}

</mosaic_0001>

<bundles_post_ra>
// kernel: positional_encoding_forward.1
= control target key start
LH: loop header
LB: loop body
LE: loop exit
PB: predicated region body
PF: predicated region fallthrough
CT: control target
= control target key end

     0   :  { %7 = vsyncpa [#allocation3], 0  ;;  %s259_s0 = inlined_call_operand.hbm [shape: f32[2,64,128], index: 0, kind: input, shape index: {}, may-alias: {0,2}]   ;;  %s260_s1 = inlined_call_operand.hbm [shape: f32[128,128], index: 1, kind: input, shape index: {}]   ;;  %s261_s2 = inlined_call_operand.hbm [shape: f32[2,64,128], index: 2, kind: output, shape index: {}, may-alias: {0,2}]  }
   0x1   :  { %8 = vsyncpa [#allocation6], 0 }
   0x2   :  { %9 = vsyncpa [#allocation4], 0  ;;  %s191_s9 = smov [#allocation2]   ;;  %s119_s13 = scalar_lea.hbm %s259_s0, 2048 }
   0x3   :  { %s15_s10 = sshll.u32 %s191_s9, 4  ;;  %p120_p0 = scmp.ne.s32.totalorder %s259_s0, %s119_s13  ;;  %s16_s10 = int_to_ptr.vmem [resolvable:$true] %s15_s10 }
   0x4   :  { %p123_p1 = scmp.lt.u32.totalorder %s119_s13, %s259_s0 }
   0x6   :  { %p125_p2 = pnand %p123_p1, %p120_p0 }
   0x8   :  { %128 = shalt.err (!%p125_p2)
}
   0x9   :  { %s129_s18 = scalar_lea.vmem %s16_s10, 2048  ;;  %p134_p4 = scmp.lt.s32.totalorder %s16_s10, %s16_s10 }
   0xa   :  { %p130_p3 = scmp.ne.s32.totalorder %s16_s10, %s129_s18  ;;  %p135_p5 = scmp.lt.s32.totalorder %s129_s18, %s129_s18 }
   0xc   :  { %p136_p6 = por %p135_p5, %p134_p4 }
   0xe   :  { %p137_p7 = pnand %p136_p6, %p130_p3 }
  0x10   :  { %140 = shalt.err (!%p137_p7)
}
  0x11   :  { %s192_s19 = smov 128   ;;  %s193_s20 = smov 8  }
  0x12   :  { %21 = dma.hbm_to_vmem [thread:$0]  %s259_s0, 2048, %s16_s10, [#allocation3], %s192_s19, %s192_s19, %s193_s20  }
  0x13   :  { %s194_s23 = smov [#allocation5]   ;;  %s141_s27 = scalar_lea.hbm %s260_s1, 1024 }
  0x14   :  { %s27_s24 = sshll.u32 %s194_s23, 4  ;;  %p142_p8 = scmp.ne.s32.totalorder %s260_s1, %s141_s27  ;;  %s28_s24 = int_to_ptr.vmem [resolvable:$true] %s27_s24 }
  0x15   :  { %s143_s4 = scalar_lea.hbm %s260_s1, 2048  ;;  %p145_p10 = scmp.lt.u32.totalorder %s141_s27, %s260_s1 }
  0x16   :  { %p144_p9 = scmp.lt.u32.totalorder %s143_s4, %s141_s27 }
  0x18   :  { %p146_p11 = por %p145_p10, %p144_p9 }
  0x1a   :  { %p147_p12 = pnand %p146_p11, %p142_p8 }
  0x1c   :  { %150 = shalt.err (!%p147_p12)
}
  0x1d   :  { %s151_s0 = scalar_lea.vmem %s28_s24, 1024  ;;  %p156_p0 = scmp.lt.s32.totalorder %s28_s24, %s28_s24 }
  0x1e   :  { %p152_p13 = scmp.ne.s32.totalorder %s28_s24, %s151_s0  ;;  %p157_p1 = scmp.lt.s32.totalorder %s151_s0, %s151_s0 }
  0x20   :  { %p158_p2 = por %p157_p1, %p156_p0 }
  0x22   :  { %p159_p3 = pnand %p158_p2, %p152_p13 }
  0x24   :  { %162 = shalt.err (!%p159_p3)
}
  0x25   :  { %33 = dma.hbm_to_vmem [thread:$0]  %s260_s1, 1024, %s28_s24, [#allocation6], %s192_s19, %s192_s19, %s193_s20  }
  0x26   :  { %185 = dma.done.wait [#allocation3], 2048  }
  0x27   :  { %186 = vsyncadd [#allocation3], 4294965248 }
  0x28   :  { %187 = dma.done.wait [#allocation6], 1024  }
  0x29   :  { %188 = vsyncadd [#allocation6], 4294966272  ;;  %v40_v0 = vld [vmem:[#allocation2] sm:$0xff]  ;;  %v41_v2 = vld [vmem:[#allocation2 + $0x8] sm:$0xff]  ;;  %s195_s1 = smov [#allocation7]  }
  0x2a   :  { %v56_v1 = vld [vmem:[#allocation5] sm:$0xff]  ;;  %v57_v4 = vld [vmem:[#allocation5 + $0x8] sm:$0xff]  ;;  %v42_v5 = vld [vmem:[#allocation2 + $0x10] sm:$0xff]  ;;  %s101_s9 = sshll.u32 %s195_s1, 4  ;;  %s102_s9 = int_to_ptr.vmem [resolvable:$true] %s101_s9 }
  0x2b   :  { %v64_v3 = vadd.f32 %v56_v1, %v40_v0  ;;  %v58_v6 = vld [vmem:[#allocation5 + $0x10] sm:$0xff]  ;;  %v65_v7 = vadd.f32 %v57_v4, %v41_v2  ;;  %v43_v9 = vld [vmem:[#allocation2 + $0x18] sm:$0xff]  ;;  %v44_v11 = vld [vmem:[#allocation2 + $0x20] sm:$0xff]  ;;  %s163_s10 = scalar_lea.vmem %s102_s9, 2048  ;;  %p168_p5 = scmp.lt.s32.totalorder %s102_s9, %s102_s9 }
  0x2c   :  { %v66_v8 = vadd.f32 %v58_v6, %v42_v5  ;;  %v59_v10 = vld [vmem:[#allocation5 + $0x18] sm:$0xff]  ;;  %v60_v13 = vld [vmem:[#allocation5 + $0x20] sm:$0xff]  ;;  %v45_v14 = vld [vmem:[#allocation2 + $0x28] sm:$0xff]  ;;  %p164_p4 = scmp.ne.s32.totalorder %s102_s9, %s163_s10  ;;  %p169_p6 = scmp.lt.s32.totalorder %s163_s10, %s163_s10 }
  0x2d   :  { %80 = vst [vmem:[#allocation7] sm:$0xff] %v64_v3  ;;  %v67_v12 = vadd.f32 %v59_v10, %v43_v9  ;;  %v61_v15 = vld [vmem:[#allocation5 + $0x28] sm:$0xff]  ;;  %81 = vst [vmem:[#allocation7 + $0x8] sm:$0xff] %v65_v7  ;;  %v68_v16 = vadd.f32 %v60_v13, %v44_v11  ;;  %v46_v18 = vld [vmem:[#allocation2 + $0x30] sm:$0xff] }
  0x2e   :  { %82 = vst [vmem:[#allocation7 + $0x10] sm:$0xff] %v66_v8  ;;  %v69_v17 = vadd.f32 %v61_v15, %v45_v14  ;;  %v62_v19 = vld [vmem:[#allocation5 + $0x30] sm:$0xff]  ;;  %v47_v20 = vld [vmem:[#allocation2 + $0x38] sm:$0xff]  ;;  %v48_v23 = vld [vmem:[#allocation2 + $0x40] sm:$0xff]  ;;  %p170_p7 = por %p169_p6, %p168_p5 }
  0x2f   :  { %83 = vst [vmem:[#allocation7 + $0x18] sm:$0xff] %v67_v12  ;;  %v70_v21 = vadd.f32 %v62_v19, %v46_v18  ;;  %v63_v22 = vld [vmem:[#allocation5 + $0x38] sm:$0xff]  ;;  %v49_v24 = vld [vmem:[#allocation2 + $0x48] sm:$0xff]  ;;  %84 = vst [vmem:[#allocation7 + $0x20] sm:$0xff] %v68_v16  ;;  %v72_v26 = vadd.f32 %v56_v1, %v48_v23 }
  0x30   :  { %85 = vst [vmem:[#allocation7 + $0x28] sm:$0xff] %v69_v17  ;;  %v71_v25 = vadd.f32 %v63_v22, %v47_v20  ;;  %v73_v27 = vadd.f32 %v57_v4, %v49_v24  ;;  %v50_v28 = vld [vmem:[#allocation2 + $0x50] sm:$0xff]  ;;  %v51_v29 = vld [vmem:[#allocation2 + $0x58] sm:$0xff]  ;;  %v52_v30 = vld [vmem:[#allocation2 + $0x60] sm:$0xff]  ;;  %p171_p8 = pnand %p170_p7, %p164_p4 }
  0x31   :  { %86 = vst [vmem:[#allocation7 + $0x30] sm:$0xff] %v70_v21  ;;  %v74_v31 = vadd.f32 %v58_v6, %v50_v28  ;;  %v75_v32 = vadd.f32 %v59_v10, %v51_v29  ;;  %v76_v33 = vadd.f32 %v60_v13, %v52_v30  ;;  %v53_v34 = vld [vmem:[#allocation2 + $0x68] sm:$0xff]  ;;  %v54_v35 = vld [vmem:[#allocation2 + $0x70] sm:$0xff]  ;;  %v55_v36 = vld [vmem:[#allocation2 + $0x78] sm:$0xff] }
  0x32   :  { %87 = vst [vmem:[#allocation7 + $0x38] sm:$0xff] %v71_v25  ;;  %88 = vst [vmem:[#allocation7 + $0x40] sm:$0xff] %v72_v26  ;;  %v77_v37 = vadd.f32 %v61_v15, %v53_v34  ;;  %v78_v38 = vadd.f32 %v62_v19, %v54_v35  ;;  %v79_v39 = vadd.f32 %v63_v22, %v55_v36 }
  0x33   :  { %89 = vst [vmem:[#allocation7 + $0x48] sm:$0xff] %v73_v27  ;;  %90 = vst [vmem:[#allocation7 + $0x50] sm:$0xff] %v74_v31 }
  0x34   :  { %91 = vst [vmem:[#allocation7 + $0x58] sm:$0xff] %v75_v32  ;;  %92 = vst [vmem:[#allocation7 + $0x60] sm:$0xff] %v76_v33 }
  0x35   :  { %93 = vst [vmem:[#allocation7 + $0x68] sm:$0xff] %v77_v37  ;;  %94 = vst [vmem:[#allocation7 + $0x70] sm:$0xff] %v78_v38 }
  0x36   :  { %95 = vst [vmem:[#allocation7 + $0x78] sm:$0xff] %v79_v39 }
  0x37   :  { %174 = shalt.err (!%p171_p8)
}
  0x38   :  { %s175_s13 = scalar_lea.hbm %s261_s2, 2048 }
  0x39   :  { %p176_p9 = scmp.ne.s32.totalorder %s261_s2, %s175_s13  ;;  %p179_p10 = scmp.lt.u32.totalorder %s175_s13, %s261_s2 }
  0x3b   :  { %p181_p11 = pnand %p179_p10, %p176_p9 }
  0x3d   :  { %184 = shalt.err (!%p181_p11)
}
  0x3e   :  { %107 = dma.vmem_to_hbm [thread:$0]  %s102_s9, 2048, %s261_s2, [#allocation4], %s192_s19, %s192_s19, %s193_s20  }
  0x3f   :  { %189 = dma.done.wait [#allocation4], 2048  }
  0x40   :  { %190 = vsyncadd [#allocation4], 4294965248 }
  0x41   :  { %111 = vsyncpa [#allocation3], 1 }
  0x42   :  { %112 = vsyncpa [#allocation6], 1 }
  0x43   :  { %113 = vsyncpa [#allocation4], 1 }

</bundles_post_ra>
